<compile_context>
chip_gen: v7x
topology: tpu7x:2x2x1
jax: 0.10.0
libtpu: 0.0.40
codegen_flags: <defaults>
</compile_context>

<pallas_src>
import jax
import jax.numpy as jnp
from jax.experimental import pallas as pl
from jax.experimental.pallas import tpu as pltpu

HIDDEN1 = 128
HIDDEN2 = 64
MAX_TILE_B = 512  # HBM-roofline sweet spot for mem-bound tiles.


def _round_up(x, m):
    return (x + m - 1) // m * m


def _select_tile_b(B):
    """Batch tile: tiny batches -> single minimal step; mid -> 2 steps (v7x
    megacore has work on both TCs); large -> 512-row tiles for DMA efficiency."""
    if B >= 2 * MAX_TILE_B:
        return MAX_TILE_B
    if B >= 256:
        return _round_up(pl.cdiv(B, 2), 8)
    return _round_up(max(B, 1), 8)


def mlp_kernel(x_ref, w1_ref, b1_ref, w2_ref, b2_ref, w3_ref, b3_ref, o_ref):
    # x arrives f32; cast to bf16 in-kernel (VPU cast, hidden under DMA).
    x = x_ref[...].astype(jnp.bfloat16)
    # fc1 + ReLU: bf16 operands, f32 accumulation on the MXU.
    h1 = jnp.dot(x, w1_ref[...], preferred_element_type=jnp.float32)
    h1 = jnp.maximum(h1 + b1_ref[...], 0.0)
    # fc2 + ReLU.
    h2 = jnp.dot(h1.astype(jnp.bfloat16), w2_ref[...],
                 preferred_element_type=jnp.float32)
    h2 = jnp.maximum(h2 + b2_ref[...], 0.0)
    # fc3: logits, stored bf16 (halves the dominant HBM writeback stream).
    h3 = jnp.dot(h2.astype(jnp.bfloat16), w3_ref[...],
                 preferred_element_type=jnp.float32)
    o_ref[...] = (h3 + b3_ref[...]).astype(o_ref.dtype)


def prepare_params(params):
    """One-time weight prep (do NOT call per forward): bf16 weights for the
    MXU, f32 biases for the f32 accumulator. Layout is (in_features, out)."""
    return {
        "w1": params["w1"].astype(jnp.bfloat16),
        "b1": params["b1"].astype(jnp.float32),
        "w2": params["w2"].astype(jnp.bfloat16),
        "b2": params["b2"].astype(jnp.float32),
        "w3": params["w3"].astype(jnp.bfloat16),
        "b3": params["b3"].astype(jnp.float32),
    }


def neural_network_forward(x, prepared):
    """Forward pass of the 3-layer MLP as a single batch-tiled Pallas kernel.

    x: (B, input_size) float32
    prepared: output of prepare_params (bf16 weights, f32 biases).
    Returns (B, num_classes) float32 logits.
    """
    w1, b1 = prepared["w1"], prepared["b1"]
    w2, b2 = prepared["w2"], prepared["b2"]
    w3, b3 = prepared["w3"], prepared["b3"]

    B, in_features = x.shape
    num_classes = w3.shape[1]

    tile_b = _select_tile_b(B)
    grid = (pl.cdiv(B, tile_b),)

    def const_spec(arr):
        # Constant block index -> weight stays resident in VMEM across steps.
        return pl.BlockSpec(arr.shape, lambda i: (0, 0))

    flops = 2 * B * (in_features * HIDDEN1
                     + HIDDEN1 * HIDDEN2
                     + HIDDEN2 * num_classes)
    bytes_accessed = (
        x.size * x.dtype.itemsize
        + sum(a.size * a.dtype.itemsize for a in (w1, b1, w2, b2, w3, b3))
        + B * num_classes * 2  # bf16 output
    )

    out = pl.pallas_call(
        mlp_kernel,
        out_shape=jax.ShapeDtypeStruct((B, num_classes), jnp.bfloat16),
        grid=grid,
        in_specs=[
            pl.BlockSpec((tile_b, in_features), lambda i: (i, 0)),
            const_spec(w1), const_spec(b1),
            const_spec(w2), const_spec(b2),
            const_spec(w3), const_spec(b3),
        ],
        # Unpadded, full-array-dim last block dim: far fewer HBM bytes than a
        # 128-lane pad when num_classes is tiny (masked vst is the cheaper side
        # of that trade here).
        out_specs=pl.BlockSpec((tile_b, num_classes), lambda i: (i, 0)),
        compiler_params=pltpu.CompilerParams(
            dimension_semantics=("parallel",)),
        cost_estimate=pl.CostEstimate(
            flops=flops, transcendentals=0, bytes_accessed=bytes_accessed),
    )(x, w1, b1, w2, b2, w3, b3)

    # Callers (loss fns etc.) expect f32 logits; upcast the tiny result only.
    return out.astype(jnp.float32)


def init_params(key, input_size, num_classes):
    """Deterministic init mimicking nn.Linear (uniform(+/-1/sqrt(fan_in))).

    Weights are stored transposed relative to PyTorch: (in_features, out_features).
    """
    dims = [(input_size, HIDDEN1), (HIDDEN1, HIDDEN2), (HIDDEN2, num_classes)]
    params = {}
    for i, (fan_in, fan_out) in enumerate(dims, start=1):
        key, kw, kb = jax.random.split(key, 3)
        bound = 1.0 / jnp.sqrt(jnp.float32(fan_in))
        params[f"w{i}"] = jax.random.uniform(
            kw, (fan_in, fan_out), jnp.float32, -bound, bound)
        params[f"b{i}"] = jax.random.uniform(
            kb, (1, fan_out), jnp.float32, -bound, bound)
    return params


def reference_forward(x, params):
    """Pure-JAX reference mirroring the kernel numerics (bf16 ops, f32 acc)."""
    bf = jnp.bfloat16
    h = jnp.dot(x.astype(bf), params["w1"].astype(bf),
                preferred_element_type=jnp.float32) + params["b1"]
    h = jnp.maximum(h, 0.0)
    h = jnp.dot(h.astype(bf), params["w2"].astype(bf),
                preferred_element_type=jnp.float32) + params["b2"]
    h = jnp.maximum(h, 0.0)
    return jnp.dot(h.astype(bf), params["w3"].astype(bf),
                   preferred_element_type=jnp.float32) + params["b3"]


if __name__ == "__main__":
    batch = 8
    input_size = 32
    num_classes = 4

    key = jax.random.PRNGKey(0)
    key, kx = jax.random.split(key)
    x = jax.random.normal(kx, (batch, input_size), jnp.float32)
    params = init_params(key, input_size, num_classes)
    prepared = prepare_params(params)  # one-time weight prep

    fwd = jax.jit(neural_network_forward)
    out = fwd(x, prepared)
    out = jax.block_until_ready(out)

    ref = reference_forward(x, params)
    assert out.shape == (batch, num_classes)
    # bf16 compute/store with f32 accumulation -> loosened tolerance vs pure-f32.
    assert jnp.allclose(out, ref, atol=2e-2, rtol=2e-2), (
        f"max abs err {jnp.max(jnp.abs(out - ref))}")
    print("KERNEL_OK")
</pallas_src>

<mosaic_0001>
module attributes {stable_mosaic.version = 11 : i64} {
  func.func @mlp_kernel(%arg0: i32, %arg1: memref<8x32xf32, #tpu.memory_space<vmem>>, %arg2: memref<32x128xbf16, #tpu.memory_space<vmem>>, %arg3: memref<1x128xf32, #tpu.memory_space<vmem>>, %arg4: memref<128x64xbf16, #tpu.memory_space<vmem>>, %arg5: memref<1x64xf32, #tpu.memory_space<vmem>>, %arg6: memref<64x4xbf16, #tpu.memory_space<vmem>>, %arg7: memref<1x4xf32, #tpu.memory_space<vmem>>, %arg8: memref<8x4xbf16, #tpu.memory_space<vmem>>) attributes {dimension_semantics = [#tpu.dimension_semantics<parallel>], iteration_bounds = array<i64: 1>, scalar_prefetch = 0 : i64, scratch_operands = 0 : i64, tpu.core_type = #tpu.core_type<tc>, window_params = [{transform_indices = @transform_0, window_bounds = array<i64: 8, 32>}, {pipeline_mode = #tpu.pipeline_mode<synchronous>, transform_indices = @transform_1, window_bounds = array<i64: 32, 128>}, {pipeline_mode = #tpu.pipeline_mode<synchronous>, transform_indices = @transform_2, window_bounds = array<i64: 1, 128>}, {pipeline_mode = #tpu.pipeline_mode<synchronous>, transform_indices = @transform_3, window_bounds = array<i64: 128, 64>}, {pipeline_mode = #tpu.pipeline_mode<synchronous>, transform_indices = @transform_4, window_bounds = array<i64: 1, 64>}, {pipeline_mode = #tpu.pipeline_mode<synchronous>, transform_indices = @transform_5, window_bounds = array<i64: 64, 4>}, {pipeline_mode = #tpu.pipeline_mode<synchronous>, transform_indices = @transform_6, window_bounds = array<i64: 1, 4>}, {transform_indices = @transform_7, window_bounds = array<i64: 8, 4>}]} {
    %c0 = arith.constant 0 : index
    %c0_0 = arith.constant 0 : index
    %0 = vector.load %arg1[%c0, %c0_0] : memref<8x32xf32, #tpu.memory_space<vmem>>, vector<8x32xf32>
    %1 = arith.truncf %0 : vector<8x32xf32> to vector<8x32xbf16>
    %c0_1 = arith.constant 0 : index
    %c0_2 = arith.constant 0 : index
    %2 = vector.load %arg2[%c0_1, %c0_2] : memref<32x128xbf16, #tpu.memory_space<vmem>>, vector<32x128xbf16>
    %cst = arith.constant dense<0.000000e+00> : vector<8x128xf32>
    %3 = tpu.matmul %1, %2, %cst {dimension_numbers = #tpu.dot_dimension_numbers<[1], [0], [0], [1], [0, 0, 1, 1], [], []>} : vector<8x32xbf16>, vector<32x128xbf16>, vector<8x128xf32> -> vector<8x128xf32>
    %c0_3 = arith.constant 0 : index
    %c0_4 = arith.constant 0 : index
    %4 = vector.load %arg3[%c0_3, %c0_4] : memref<1x128xf32, #tpu.memory_space<vmem>>, vector<1x128xf32>
    %5 = vector.broadcast %4 : vector<1x128xf32> to vector<8x128xf32>
    %6 = arith.addf %3, %5 : vector<8x128xf32>
    %cst_5 = arith.constant 0.000000e+00 : f32
    %7 = vector.broadcast %cst_5 : f32 to vector<8x128xf32>
    %8 = arith.maximumf %6, %7 : vector<8x128xf32>
    %9 = arith.truncf %8 : vector<8x128xf32> to vector<8x128xbf16>
    %c0_6 = arith.constant 0 : index
    %c0_7 = arith.constant 0 : index
    %10 = vector.load %arg4[%c0_6, %c0_7] : memref<128x64xbf16, #tpu.memory_space<vmem>>, vector<128x64xbf16>
    %cst_8 = arith.constant dense<0.000000e+00> : vector<8x64xf32>
    %11 = tpu.matmul %9, %10, %cst_8 {dimension_numbers = #tpu.dot_dimension_numbers<[1], [0], [0], [1], [0, 0, 1, 1], [], []>} : vector<8x128xbf16>, vector<128x64xbf16>, vector<8x64xf32> -> vector<8x64xf32>
    %c0_9 = arith.constant 0 : index
    %c0_10 = arith.constant 0 : index
    %12 = vector.load %arg5[%c0_9, %c0_10] : memref<1x64xf32, #tpu.memory_space<vmem>>, vector<1x64xf32>
    %13 = vector.broadcast %12 : vector<1x64xf32> to vector<8x64xf32>
    %14 = arith.addf %11, %13 : vector<8x64xf32>
    %cst_11 = arith.constant 0.000000e+00 : f32
    %15 = vector.broadcast %cst_11 : f32 to vector<8x64xf32>
    %16 = arith.maximumf %14, %15 : vector<8x64xf32>
    %17 = arith.truncf %16 : vector<8x64xf32> to vector<8x64xbf16>
    %c0_12 = arith.constant 0 : index
    %c0_13 = arith.constant 0 : index
    %18 = vector.load %arg6[%c0_12, %c0_13] : memref<64x4xbf16, #tpu.memory_space<vmem>>, vector<64x4xbf16>
    %cst_14 = arith.constant dense<0.000000e+00> : vector<8x4xf32>
    %19 = tpu.matmul %17, %18, %cst_14 {dimension_numbers = #tpu.dot_dimension_numbers<[1], [0], [0], [1], [0, 0, 1, 1], [], []>} : vector<8x64xbf16>, vector<64x4xbf16>, vector<8x4xf32> -> vector<8x4xf32>
    %c0_15 = arith.constant 0 : index
    %c0_16 = arith.constant 0 : index
    %20 = vector.load %arg7[%c0_15, %c0_16] : memref<1x4xf32, #tpu.memory_space<vmem>>, vector<1x4xf32>
    %21 = vector.broadcast %20 : vector<1x4xf32> to vector<8x4xf32>
    %22 = arith.addf %19, %21 : vector<8x4xf32>
    %23 = arith.truncf %22 : vector<8x4xf32> to vector<8x4xbf16>
    %c0_17 = arith.constant 0 : index
    %c0_18 = arith.constant 0 : index
    %24 = vector.load %arg8[%c0_17, %c0_18] : memref<8x4xbf16, #tpu.memory_space<vmem>>, vector<8x4xbf16>
    tpu.vector_store %arg8[%c0_17, %c0_18], %23 {strides = array<i32>} : memref<8x4xbf16, #tpu.memory_space<vmem>>, vector<8x4xbf16>,
    return
  }
  func.func @transform_0(%arg0: i32) -> (i32, i32) {
    %c0_i32 = arith.constant 0 : i32
    %c0_i32_0 = arith.constant 0 : i32
    return %arg0, %c0_i32 : i32, i32
  }
  func.func @transform_1(%arg0: i32) -> (i32, i32) {
    %c0_i32 = arith.constant 0 : i32
    %c0_i32_0 = arith.constant 0 : i32
    %c0_i32_1 = arith.constant 0 : i32
    return %c0_i32, %c0_i32_0 : i32, i32
  }
  func.func @transform_2(%arg0: i32) -> (i32, i32) {
    %c0_i32 = arith.constant 0 : i32
    %c0_i32_0 = arith.constant 0 : i32
    %c0_i32_1 = arith.constant 0 : i32
    return %c0_i32, %c0_i32_0 : i32, i32
  }
  func.func @transform_3(%arg0: i32) -> (i32, i32) {
    %c0_i32 = arith.constant 0 : i32
    %c0_i32_0 = arith.constant 0 : i32
    %c0_i32_1 = arith.constant 0 : i32
    return %c0_i32, %c0_i32_0 : i32, i32
  }
  func.func @transform_4(%arg0: i32) -> (i32, i32) {
    %c0_i32 = arith.constant 0 : i32
    %c0_i32_0 = arith.constant 0 : i32
    %c0_i32_1 = arith.constant 0 : i32
    return %c0_i32, %c0_i32_0 : i32, i32
  }
  func.func @transform_5(%arg0: i32) -> (i32, i32) {
    %c0_i32 = arith.constant 0 : i32
    %c0_i32_0 = arith.constant 0 : i32
    %c0_i32_1 = arith.constant 0 : i32
    return %c0_i32, %c0_i32_0 : i32, i32
  }
  func.func @transform_6(%arg0: i32) -> (i32, i32) {
    %c0_i32 = arith.constant 0 : i32
    %c0_i32_0 = arith.constant 0 : i32
    %c0_i32_1 = arith.constant 0 : i32
    return %c0_i32, %c0_i32_0 : i32, i32
  }
  func.func @transform_7(%arg0: i32) -> (i32, i32) {
    %c0_i32 = arith.constant 0 : i32
    %c0_i32_0 = arith.constant 0 : i32
    return %arg0, %c0_i32 : i32, i32
  }
}

</mosaic_0001>

<bundles_post_ra>
// kernel: neural_network_forward.1
= control target key start
LH: loop header
LB: loop body
LE: loop exit
PB: predicated region body
PF: predicated region fallthrough
CT: control target
= control target key end

     0   :  { %v393_v0 = vmov 0.0   ;;  %vm394_vm0 = vmmov 0   ;;  %vm52_vm1 = vcmask 261120   ;;  %vm250_vm2 = vcmask 523264   ;;  %s495_s1 = inlined_call_operand.vmem [shape: bf16[32,128], index: 1, kind: input, shape index: {}]   ;;  %s496_s0 = inlined_call_operand.vmem [shape: f32[8,32], index: 0, kind: input, shape index: {}]   ;;  %s497_s3 = inlined_call_operand.vmem [shape: bf16[128,64], index: 3, kind: input, shape index: {}]   ;;  %s498_s5 = inlined_call_operand.vmem [shape: bf16[64,4], index: 5, kind: input, shape index: {}]   ;;  %s499_s2 = inlined_call_operand.vmem [shape: f32[1,128], index: 2, kind: input, shape index: {}]   ;;  %s500_s4 = inlined_call_operand.vmem [shape: f32[1,64], index: 4, kind: input, shape index: {}]   ;;  %s501_s6 = inlined_call_operand.vmem [shape: f32[1,4], index: 6, kind: input, shape index: {}]   ;;  %s502_s7 = inlined_call_operand.vmem [shape: bf16[8,4], index: 7, kind: output, shape index: {}]  }
   0x1   :  { %337 = vmatprep.subr.bf16.mxu0 %v393_v0  ;;  %v379_v1 = vld [vmem:[%s495_s1] sm:$0xff]   ;;  %341 = vmatprep.mubr.msk.bf16.mxu0 %vm394_vm0, %v393_v0  ;;  %v380_v2 = vld [vmem:[%s495_s1 + $0x8] sm:$0xff]   ;;  %v383_v7 = vld [vmem:[%s497_s3 + $0x10] sm:$0xff]   ;;  %vm295_vm3 = vcmask 27648  }
   0x2   :  { %345 = vmatprep.subr.bf16.mxu1 %v393_v0  ;;  %361 = vmatprep.mubr.msk.bf16.mxu1 %vm394_vm0, %v393_v0  ;;  %v27_v3 = vld [vmem:[%s496_s0] sm:$0xff]  ;;  %v382_v6 = vld [vmem:[%s497_s3 + $0x8] sm:$0xff]   ;;  %v384_v8 = vld [vmem:[%s497_s3 + $0x18] sm:$0xff]  }
   0x3   :  { %338 = vmatpush3.bf16.msra.mxu0 %v379_v1  ;;  %v381_v4 = vld [vmem:[%s497_s3] sm:$0xff]   ;;  %v28_v5 = vpack.c.bf16 %v27_v3, %v27_v3  ;;  %v386_v10 = vld [vmem:[%s497_s3 + $0x28] sm:$0xff]   ;;  %v387_v11 = vld [vmem:[%s497_s3 + $0x30] sm:$0xff]  }
   0x4   :  { %339 = vmatprep.subr.bf16.mxu0 %v393_v0  ;;  %346 = vmatpush3.bf16.msra.mxu1 %v381_v4  ;;  %v385_v9 = vld [vmem:[%s497_s3 + $0x20] sm:$0xff]   ;;  %v388_v12 = vld [vmem:[%s497_s3 + $0x38] sm:$0xff]   ;;  %v390_v14 = vld [vmem:[%s498_s5 + $0x8] sm:$0xff]  }
   0x5   :  { %347 = vmatprep.subr.bf16.mxu1 %v393_v0  ;;  %v389_v13 = vld [vmem:[%s498_s5] sm:$0xff]   ;;  %v391_v23 = vld [vmem:[%s498_s5 + $0x10] sm:$0xff]   ;;  %v392_v24 = vld [vmem:[%s498_s5 + $0x18] sm:$0xff]  }
   0x6   :  { %v301_v15 = vld [vmem:[%s499_s2] ss:$0 sm:$0xff] }
   0x7   :  { %340 = vmatpush3.bf16.msra.mxu0 %v380_v2  ;;  %v305_v25 = vld [vmem:[%s500_s4] ss:$0 sm:$0xff] }
   0x8   :  { %365 = vmatprep.subr.bf16.mxu0 %v393_v0  ;;  %348 = vmatpush3.bf16.msra.mxu1 %v382_v6  ;;  %v314_v33 = vld [vmem:[%s501_s6] ss:$0 sm:$0xff] }
   0x9   :  { %349 = vmatprep.subr.bf16.mxu1 %v393_v0 }
   0xa   :  { %342 = vmatmul.mubr.msk.bf16.vlgmr.msra.gmra.mrb[0].mxu0 %vm52_vm1, %v28_v5 }
   0xb   :  { %373 = vmatprep.mubr.msk.bf16.mxu0 %vm394_vm0, %v393_v0  ;;  %366 = vmatpush3.bf16.msra.mxu0 %v389_v13 }
   0xc   :  { %350 = vmatpush3.bf16.msra.mxu1 %v383_v7  ;;  %367 = vmatprep.subr.bf16.mxu0 %v393_v0 }
   0xd   :  { %351 = vmatprep.subr.bf16.mxu1 %v393_v0 }
   0xf   :  { %368 = vmatpush3.bf16.msra.mxu0 %v390_v14 }
  0x10   :  { %352 = vmatpush3.bf16.msra.mxu1 %v384_v8  ;;  %369 = vmatprep.subr.bf16.mxu0 %v393_v0 }
  0x11   :  { %353 = vmatprep.subr.bf16.mxu1 %v393_v0 }
  0x13   :  { %370 = vmatpush3.bf16.msra.mxu0 %v391_v23 }
  0x14   :  { %354 = vmatpush3.bf16.msra.mxu1 %v385_v9  ;;  %371 = vmatprep.subr.bf16.mxu0 %v393_v0 }
  0x15   :  { %355 = vmatprep.subr.bf16.mxu1 %v393_v0 }
  0x17   :  { %372 = vmatpush3.bf16.msra.mxu0 %v392_v24 }
  0x18   :  { %356 = vmatpush3.bf16.msra.mxu1 %v386_v10 }
  0x19   :  { %357 = vmatprep.subr.bf16.mxu1 %v393_v0 }
  0x1c   :  { %358 = vmatpush3.bf16.msra.mxu1 %v387_v11 }
  0x1d   :  { %359 = vmatprep.subr.bf16.mxu1 %v393_v0 }
  0x20   :  { %360 = vmatpush3.bf16.msra.mxu1 %v388_v12 }
  0xdd   :  { %v90_v16 = vpop.f32.mrb[0].mxu0 }
  0xde   :  { %v91_v17 = vadd.f32 %v301_v15, %v90_v16  ;;  %v343_v18 = vpop.f32.mrb[1].mxu0 }
  0xdf   :  { %v93_v19 = vpop.f32.mrb[2].mxu0 }
  0xe0   :  { %v96_v20 = vmax.f32 %v91_v17, 0.0  ;;  %v344_v21 = vpop.f32.mrb[3].mxu0 }
  0xe2   :  { %v97_v22 = vpack.c.bf16 %v96_v20, %v96_v20 }
  0xe4   :  { %362 = vmatmul.mubr.bf16.vlgmr.msra.gmra.mrb[0].mxu1 %v97_v22 }
 0x1b7   :  { %v203_v26 = vpop.f32.mrb[0].mxu1 }
 0x1b8   :  { %v204_v27 = vadd.f32 %v305_v25, %v203_v26  ;;  %v363_v28 = vpop.f32.mrb[1].mxu1 }
 0x1b9   :  { %v206_v29 = vpop.f32.mrb[2].mxu1 }
 0x1ba   :  { %v209_v30 = vmax.f32 %v204_v27, 0.0  ;;  %v364_v31 = vpop.f32.mrb[3].mxu1 }
 0x1bc   :  { %v210_v32 = vpack.c.bf16 %v209_v30, %v209_v30 }
 0x1be   :  { %374 = vmatmul.mubr.msk.bf16.vlgmr.msra.gmra.mrb[4].mxu0 %vm250_vm2, %v210_v32 }
 0x291   :  { %v288_v34 = vpop.f32.mrb[4].mxu0 }
 0x292   :  { %v289_v35 = vadd.f32 %v314_v33, %v288_v34  ;;  %v375_v36 = vpop.f32.mrb[5].mxu0 }
 0x293   :  { %v291_v37 = vpop.f32.mrb[6].mxu0 }
 0x294   :  { %v294_v38 = vpack.c.bf16 %v289_v35, %v289_v35  ;;  %v376_v39 = vpop.f32.mrb[7].mxu0 }
 0x296   :  { %296 = vst.msk [vmem:[%s502_s7] sm:$0xf] %vm295_vm3, %v294_v38 }

</bundles_post_ra>
